<compile_context>
chip_gen: v5e
topology: v5e:2x2
jax: 0.10.0
libtpu: 0.0.40
codegen_flags: <defaults>
</compile_context>

<pallas_src>
import math
from functools import partial

import numpy as np
import jax
import jax.numpy as jnp
from jax.experimental import pallas as pl
from jax.experimental.pallas import tpu as pltpu


def _vmem_capacity_bytes():
    try:
        return int(pltpu.get_tpu_info().vmem_capacity_bytes)
    except Exception:
        # Conservative fallback (v7x per-TensorCore VMEM).
        return 64 * 1024 * 1024


def _pos_append_kernel(placement_ref, phase_ref, x_ref, pos_ref, out_ref, *,
                       init_dim, n_dims):
    # placement_ref: (N, T) f32; placement[d, t] = period of column t if column t
    #                encodes positional dimension d, else 0.
    # phase_ref:     (1, T) f32; 0 on sin columns, pi/2 on cos columns.
    # x_ref:         (tm, E)      input feature block
    # pos_ref:       (tm, N)      per-row positional indices (int32)
    # out_ref:       (tm, E + T)  with T = 2 * sum(encoding_nums)
    out_ref[:, :init_dim] = x_ref[...].astype(out_ref.dtype)

    pos = pos_ref[...].astype(jnp.float32)                     # (tm, N) f32
    placement = placement_ref[...]                             # (N, T)

    # pre[:, t] = pos[:, dim(t)] * period(t): broadcast mul-add over the small
    # static number of positional dims (zero placement entries contribute 0.0).
    pre = pos[:, 0:1] * placement[0:1, :]                      # (tm, T)
    for d in range(1, n_dims):
        pre = pre + pos[:, d:d + 1] * placement[d:d + 1, :]

    # Single EUP pass: sin on sin-columns, sin(x + pi/2) == cos(x) on cos-columns.
    tail = jnp.sin(pre + phase_ref[...])                       # (tm, T) f32
    out_ref[:, init_dim:] = tail.astype(out_ref.dtype)         # single lane-dense store


class PositionalAppendingLayer:
    def __init__(self, encoding_nums, base_periods_pre_exp=None):
        self.encoding_nums = tuple(int(e) for e in encoding_nums)
        if base_periods_pre_exp is None:
            base_periods_pre_exp = [-math.log(10000.0) / e for e in self.encoding_nums]
        self.base_periods_pre_exp = tuple(float(b) for b in base_periods_pre_exp)

        # Precompute the (N, T) period/placement matrix and (1, T) phase vector
        # once on the host; they are passed as (tiny, constant-index) kernel
        # inputs — NOT captured constants (Pallas rejects captured arrays).
        N = len(self.encoding_nums)
        T = 2 * sum(self.encoding_nums)
        placement = np.zeros((N, T), dtype=np.float32)
        phase = np.zeros((1, T), dtype=np.float32)
        col = 0
        for d, (e, b) in enumerate(zip(self.encoding_nums, self.base_periods_pre_exp)):
            periods = np.exp(np.arange(e, dtype=np.float64) * b).astype(np.float32)
            placement[d, col:col + e] = periods                    # sin columns
            placement[d, col + e:col + 2 * e] = periods            # cos columns
            phase[0, col + e:col + 2 * e] = np.float32(np.pi / 2)  # cos = sin(x + pi/2)
            col += 2 * e
        self._placement = placement
        self._phase = phase

    @property
    def additional_output(self):
        return 2 * sum(self.encoding_nums)

    def _choose_tiles(self, M, E, N, out_dim, itemsize):
        lanes = lambda n: pl.cdiv(max(n, 1), 128) * 128
        # Double-buffered VMEM per tile row (lane-padded): x + positions + out.
        per_row = 2 * (lanes(E) * itemsize + lanes(N) * 4 + lanes(out_dim) * itemsize)
        cap = _vmem_capacity_bytes()
        # ~20 MiB tile budget on 64 MiB VMEM (v7x), ~40 MiB on 128 MiB (v5e/v6e).
        budget = max(16 * 1024 * 1024, (cap * 5) // 16)
        tm = (budget // per_row) // 8 * 8
        tm = max(8, min(1024, tm))
        m_pad8 = pl.cdiv(M, 8) * 8
        tm = min(tm, m_pad8)
        # Keep >= ~8 grid steps (>= 2-4 per TensorCore on v7x) so the pipeline can
        # overlap DMA and compute, as long as tiles stay >= 64 rows.
        while tm > 64 and pl.cdiv(M, tm) < 8:
            tm = max(64, ((tm // 2) + 7) // 8 * 8)
        grid_m = pl.cdiv(M, tm)
        vmem_limit = min((cap * 3) // 4, 112 * 1024 * 1024)
        return tm, grid_m, vmem_limit

    def __call__(self, X, positions):
        *lead, E = X.shape
        N = positions.shape[-1]
        assert N == len(self.encoding_nums), \
            "positions last dim must equal len(encoding_nums)"

        M = math.prod(lead) if lead else 1
        x2 = X.reshape(M, E)
        # Keep positions in their integer dtype; cast to f32 in-kernel
        # (exact for |pos| < 2^24, matching the f32 reference math).
        p2 = positions.reshape(M, N)

        out_dim = E + self.additional_output
        itemsize = jnp.dtype(X.dtype).itemsize
        tm, grid_m, vmem_limit = self._choose_tiles(M, E, N, out_dim, itemsize)

        placement = jnp.asarray(self._placement)
        phase = jnp.asarray(self._phase)

        kernel = partial(_pos_append_kernel, init_dim=E, n_dims=N)

        # No host-side pad/slice: the (possibly partial) last row block is handled
        # by Pallas — input reads past M are bounded garbage (sin/cos stays finite)
        # and output writes past M are masked.
        out = pl.pallas_call(
            kernel,
            out_shape=jax.ShapeDtypeStruct((M, out_dim), X.dtype),
            grid_spec=pltpu.PrefetchScalarGridSpec(
                num_scalar_prefetch=0,
                grid=(grid_m,),
                in_specs=[
                    pl.BlockSpec(placement.shape, lambda i: (0, 0)),  # tiny, fetched once
                    pl.BlockSpec(phase.shape, lambda i: (0, 0)),      # tiny, fetched once
                    pl.BlockSpec((tm, E), lambda i: (i, 0)),
                    pl.BlockSpec((tm, N), lambda i: (i, 0)),
                ],
                out_specs=pl.BlockSpec((tm, out_dim), lambda i: (i, 0)),
            ),
            compiler_params=pltpu.CompilerParams(
                dimension_semantics=("parallel",),
                vmem_limit_bytes=vmem_limit),
        )(placement, phase, x2, p2)

        return out.reshape(*lead, out_dim)


def _reference_forward(X, positions, encoding_nums, bppes):
    """Pure-JAX reference mirroring the PyTorch forward exactly."""
    items = [X]
    pos = positions.astype(jnp.float32)
    for d, (e, b) in enumerate(zip(encoding_nums, bppes)):
        periods = jnp.exp(jnp.arange(e, dtype=jnp.float32) * b)
        pre = pos[..., d:d + 1] * periods
        items.append(jnp.sin(pre).astype(X.dtype))
        items.append(jnp.cos(pre).astype(X.dtype))
    return jnp.concatenate(items, axis=-1)


if __name__ == "__main__":
    key = jax.random.PRNGKey(0)
    kx, kp, kx2 = jax.random.split(key, 3)

    # Case 1: 2 positional dims, M divisible by 8.
    batch, D1, D2, E = 2, 4, 4, 32
    encoding_nums = (4, 3)
    X = jax.random.normal(kx, (batch, D1, D2, E), dtype=jnp.float32)
    i_idx = jnp.broadcast_to(jnp.arange(D1)[None, :, None], (batch, D1, D2))
    j_idx = jnp.broadcast_to(jnp.arange(D2)[None, None, :], (batch, D1, D2))
    positions = jnp.stack([i_idx, j_idx], axis=-1).astype(jnp.int32)   # (batch, D1, D2, 2)

    layer = PositionalAppendingLayer(encoding_nums)
    out = jax.block_until_ready(layer(X, positions))
    expected_shape = (batch, D1, D2, E + layer.additional_output)
    assert out.shape == expected_shape, (out.shape, expected_shape)
    ref = _reference_forward(X, positions, layer.encoding_nums, layer.base_periods_pre_exp)
    assert jnp.allclose(out, ref, atol=2e-5, rtol=1e-5), float(jnp.max(jnp.abs(out - ref)))

    # Case 2: 1 positional dim, M not a multiple of the row tile (exercises the
    # masked partial-last-block path, no host pad/slice).
    B2, S2, E2 = 3, 10, 16
    enc2 = (5,)
    X2 = jax.random.normal(kx2, (B2, S2, E2), dtype=jnp.float32)
    pos2 = jnp.broadcast_to(jnp.arange(S2)[None, :, None], (B2, S2, 1)).astype(jnp.int32)
    layer2 = PositionalAppendingLayer(enc2)
    out2 = jax.block_until_ready(layer2(X2, pos2))
    assert out2.shape == (B2, S2, E2 + layer2.additional_output)
    ref2 = _reference_forward(X2, pos2, layer2.encoding_nums, layer2.base_periods_pre_exp)
    assert jnp.allclose(out2, ref2, atol=2e-5, rtol=1e-5), float(jnp.max(jnp.abs(out2 - ref2)))

    print("KERNEL_OK")
</pallas_src>

<mosaic_0001>
module attributes {stable_mosaic.version = 11 : i64} {
  func.func @_pos_append_kernel(%arg0: i32, %arg1: memref<2x14xf32, #tpu.memory_space<vmem>>, %arg2: memref<1x14xf32, #tpu.memory_space<vmem>>, %arg3: memref<32x32xf32, #tpu.memory_space<vmem>>, %arg4: memref<32x2xi32, #tpu.memory_space<vmem>>, %arg5: memref<32x46xf32, #tpu.memory_space<vmem>>) attributes {dimension_semantics = [#tpu.dimension_semantics<parallel>], iteration_bounds = array<i64: 1>, scalar_prefetch = 0 : i64, scratch_operands = 0 : i64, tpu.core_type = #tpu.core_type<tc>, window_params = [{pipeline_mode = #tpu.pipeline_mode<synchronous>, transform_indices = @transform_0, window_bounds = array<i64: 2, 14>}, {pipeline_mode = #tpu.pipeline_mode<synchronous>, transform_indices = @transform_1, window_bounds = array<i64: 1, 14>}, {transform_indices = @transform_2, window_bounds = array<i64: 32, 32>}, {transform_indices = @transform_3, window_bounds = array<i64: 32, 2>}, {transform_indices = @transform_4, window_bounds = array<i64: 32, 46>}]} {
    %c0 = arith.constant 0 : index
    %c0_0 = arith.constant 0 : index
    %0 = vector.load %arg3[%c0, %c0_0] : memref<32x32xf32, #tpu.memory_space<vmem>>, vector<32x32xf32>
    %c0_1 = arith.constant 0 : index
    %c0_2 = arith.constant 0 : index
    %1 = vector.load %arg5[%c0_1, %c0_2] : memref<32x46xf32, #tpu.memory_space<vmem>>, vector<32x32xf32>
    tpu.vector_store %arg5[%c0_1, %c0_2], %0 {strides = array<i32>} : memref<32x46xf32, #tpu.memory_space<vmem>>, vector<32x32xf32>,
    %c0_3 = arith.constant 0 : index
    %c0_4 = arith.constant 0 : index
    %2 = vector.load %arg4[%c0_3, %c0_4] : memref<32x2xi32, #tpu.memory_space<vmem>>, vector<32x2xi32>
    %3 = arith.sitofp %2 : vector<32x2xi32> to vector<32x2xf32>
    %c0_5 = arith.constant 0 : index
    %c0_6 = arith.constant 0 : index
    %4 = vector.load %arg1[%c0_5, %c0_6] : memref<2x14xf32, #tpu.memory_space<vmem>>, vector<2x14xf32>
    %5 = vector.extract_strided_slice %3 {offsets = [0, 0], sizes = [32, 1], strides = [1, 1]} : vector<32x2xf32> to vector<32x1xf32>
    %6 = vector.extract_strided_slice %4 {offsets = [0, 0], sizes = [1, 14], strides = [1, 1]} : vector<2x14xf32> to vector<1x14xf32>
    %7 = vector.broadcast %5 : vector<32x1xf32> to vector<32x14xf32>
    %8 = vector.broadcast %6 : vector<1x14xf32> to vector<32x14xf32>
    %9 = arith.mulf %7, %8 : vector<32x14xf32>
    %10 = vector.extract_strided_slice %3 {offsets = [0, 1], sizes = [32, 1], strides = [1, 1]} : vector<32x2xf32> to vector<32x1xf32>
    %11 = vector.extract_strided_slice %4 {offsets = [1, 0], sizes = [1, 14], strides = [1, 1]} : vector<2x14xf32> to vector<1x14xf32>
    %12 = vector.broadcast %10 : vector<32x1xf32> to vector<32x14xf32>
    %13 = vector.broadcast %11 : vector<1x14xf32> to vector<32x14xf32>
    %14 = arith.mulf %12, %13 : vector<32x14xf32>
    %15 = arith.addf %9, %14 : vector<32x14xf32>
    %c0_7 = arith.constant 0 : index
    %c0_8 = arith.constant 0 : index
    %16 = vector.load %arg2[%c0_7, %c0_8] : memref<1x14xf32, #tpu.memory_space<vmem>>, vector<1x14xf32>
    %17 = vector.broadcast %16 : vector<1x14xf32> to vector<32x14xf32>
    %18 = arith.addf %15, %17 : vector<32x14xf32>
    %19 = math.sin %18 : vector<32x14xf32>
    %c0_9 = arith.constant 0 : index
    %c32 = arith.constant 32 : index
    %20 = vector.load %arg5[%c0_9, %c32] : memref<32x46xf32, #tpu.memory_space<vmem>>, vector<32x14xf32>
    tpu.vector_store %arg5[%c0_9, %c32], %19 {strides = array<i32>} : memref<32x46xf32, #tpu.memory_space<vmem>>, vector<32x14xf32>,
    return
  }
  func.func @transform_0(%arg0: i32) -> (i32, i32) {
    %c0_i32 = arith.constant 0 : i32
    %c0_i32_0 = arith.constant 0 : i32
    %c0_i32_1 = arith.constant 0 : i32
    return %c0_i32, %c0_i32_0 : i32, i32
  }
  func.func @transform_1(%arg0: i32) -> (i32, i32) {
    %c0_i32 = arith.constant 0 : i32
    %c0_i32_0 = arith.constant 0 : i32
    %c0_i32_1 = arith.constant 0 : i32
    return %c0_i32, %c0_i32_0 : i32, i32
  }
  func.func @transform_2(%arg0: i32) -> (i32, i32) {
    %c0_i32 = arith.constant 0 : i32
    %c0_i32_0 = arith.constant 0 : i32
    return %arg0, %c0_i32 : i32, i32
  }
  func.func @transform_3(%arg0: i32) -> (i32, i32) {
    %c0_i32 = arith.constant 0 : i32
    %c0_i32_0 = arith.constant 0 : i32
    return %arg0, %c0_i32 : i32, i32
  }
  func.func @transform_4(%arg0: i32) -> (i32, i32) {
    %c0_i32 = arith.constant 0 : i32
    %c0_i32_0 = arith.constant 0 : i32
    return %arg0, %c0_i32 : i32, i32
  }
}

</mosaic_0001>

<bundles_post_ra>
// kernel: tpu_custom_call.1
= control target key start
LH: loop header
LB: loop body
LE: loop exit
PB: predicated region body
PF: predicated region fallthrough
CT: control target
= control target key end

     0   :  { %9 = vsyncpa [#allocation3], 0  ;;  %s1389_s0 = inlined_call_operand.vmem [shape: f32[2,14], index: 0, kind: input, shape index: {}]   ;;  %s1390_s1 = inlined_call_operand.hbm [shape: f32[1,14], index: 1, kind: input, shape index: {}]   ;;  %s1391_s2 = inlined_call_operand.vmem [shape: f32[32,32], index: 2, kind: input, shape index: {}]   ;;  %s1392_s3 = inlined_call_operand.vmem [shape: s32[32,2], index: 3, kind: input, shape index: {}]   ;;  %s1393_s4 = inlined_call_operand.hbm [shape: f32[32,46], index: 4, kind: output, shape index: {}]  }
   0x1   :  { %10 = vsyncpa [#allocation4], 0  ;;  %s18_s17 = sshll.u32 %s1390_s1, 4  ;;  %s851_s18 = smov [#allocation2]   ;;  %s19_s17 = int_to_ptr.hbm [resolvable:$true] %s18_s17 }
   0x2   :  { %s20_s19 = sshll.u32 %s851_s18, 4  ;;  %s21_s19 = int_to_ptr.vmem [resolvable:$true] %s20_s19 }
   0x3   :  { %23 = dma.hbm_to_vmem [thread:$0]  %s19_s17, 16, %s21_s19, [#allocation3]  }
   0x4   :  { %847 = dma.done.wait [#allocation3], 16  }
   0x5   :  { %848 = vsyncadd [#allocation3], 4294967280  ;;  %v852_v0 = vmov 0   ;;  %v853_v1 = vmov 1   ;;  %v43_v2 = vld [vmem:[%s1392_s3 + $0x10] sm:$0xff]  ;;  %v41_v3 = vld [vmem:[%s1392_s3] sm:$0xff] }
   0x6   :  { %794 = vset.pattern.permute.xlu1 %v852_v0  ;;  %793 = vset.pattern.permute.xlu0 %v852_v0  ;;  %v47_v4 = vcvt.s32.f32 %v43_v2  ;;  %v45_v5 = vcvt.s32.f32 %v41_v3  ;;  %v44_v6 = vld [vmem:[%s1392_s3 + $0x18] sm:$0xff]  ;;  %v42_v7 = vld [vmem:[%s1392_s3 + $0x8] sm:$0xff]  ;;  %v49_v10 = vld [vmem:[%s1389_s0] sm:$0x3]  ;;  %v854_v47 = vmov 683565275  }
   0x7   :  { %795 = vset.pattern.permute.xlu2 %v853_v1  ;;  %v48_v8 = vcvt.s32.f32 %v44_v6  ;;  %v46_v9 = vcvt.s32.f32 %v42_v7  ;;  %v91_v12 = vperm.slane %v49_v10, 1  ;;  %v70_v13 = vperm.slane %v49_v10, 0  ;;  %v798_v17 = vld [vmem:[#allocation2] ss:$0 sm:$0xff]  ;;  %s860_s0 = smov 32   ;;  %s861_s10 = smov [#allocation5]  }
   0x8   :  { %62 = vperm.xlu1 %794, %v47_v4   ;;  %52 = vperm.xlu0 %793, %v45_v5   ;;  %v855_v51 = vmov 2475754826   ;;  %v856_v53 = vmov 2131351028   ;;  %v857_v58 = vmov 2102212464  }
   0x9   :  { %76 = vperm.xlu2 %795, %v45_v5   ;;  %v858_v63 = vmov 920167782   ;;  %s753_s11 = sshll.u32 %s861_s10, 4  ;;  %s755_s14 = sshll.u32 %s1393_s4, 4  ;;  %s754_s11 = int_to_ptr.vmem [resolvable:$true] %s753_s11  ;;  %s756_s14 = int_to_ptr.hbm [resolvable:$true] %s755_s14 }
   0xa   :  { %s863_s15 = smov 8  }
  0x10   :  { %67 = vperm.xlu1 %794, %v48_v8   ;;  %57 = vperm.xlu0 %793, %v46_v9  }
  0x11   :  { %80 = vperm.xlu2 %795, %v46_v9   ;;  %v859_v9 = vmov 1326507024  }
  0x18   :  { %797 = vset.pattern.permute.xlu1 %v853_v1  ;;  %796 = vset.pattern.permute.xlu0 %v853_v1 }
  0x19   :  { %88 = vperm.xlu1 %797, %v48_v8   ;;  %84 = vperm.xlu0 %796, %v47_v4  }
  0x63   :  { %v77_v11 = vpop.permute.xlu2 %76 }
  0x64   :  { %v92_v14 = vmul.f32 %v91_v12, %v77_v11 }
  0x6b   :  { %v81_v20 = vpop.permute.xlu2 %80 }
  0x6c   :  { %v93_v23 = vmul.f32 %v91_v12, %v81_v20 }
  0x7a   :  { %v63_v15 = vpop.permute.xlu1 %62  ;;  %v53_v16 = vpop.permute.xlu0 %52 }
  0x7b   :  { %v71_v18 = vmul.f32 %v70_v13, %v53_v16  ;;  %v73_v35 = vmul.f32 %v70_v13, %v63_v15 }
  0x7d   :  { %v96_v19 = vadd.f32 %v92_v14, %v71_v18 }
  0x7f   :  { %v909_v21 = vadd.f32 %v798_v17, %v96_v19 }
  0x81   :  { %v111_v22 = vand.u32 2139095040, %v909_v21  ;;  %v108_v32 = vand.u32 2147483647, %v909_v21 }
  0x82   :  { %v68_v24 = vpop.permute.xlu1 %67  ;;  %v58_v25 = vpop.permute.xlu0 %57 }
  0x83   :  { %v112_v26 = vshrl.u32 %v111_v22, 23  ;;  %v72_v27 = vmul.f32 %v70_v13, %v58_v25  ;;  %v74_v40 = vmul.f32 %v70_v13, %v68_v24  ;;  %v115_v43 = vand.u32 8388607, %v108_v32 }
  0x85   :  { %v768_v28 = vadd.s32 4294967169, %v112_v26  ;;  %v97_v29 = vadd.f32 %v93_v23, %v72_v27  ;;  %v116_v5 = vor.u32 8388608, %v115_v43 }
  0x87   :  { %v118_v30 = vadd.s32 1, %v768_v28  ;;  %v912_v31 = vadd.f32 %v798_v17, %v97_v29  ;;  %v942_v18 = vshll.u32 %v116_v5, 8 }
  0x89   :  { %vm119_vm0 = vcmp.gt.s32.totalorder %v118_v30, 0  ;;  %v266_v33 = vand.u32 2139095040, %v912_v31  ;;  %v263_v23 = vand.u32 2147483647, %v912_v31 }
  0x8a   :  { %v120_v34 = vsel %vm119_vm0, %v118_v30, 0 }
  0x8b   :  { %v122_v36 = vand.u32 31, %v120_v34  ;;  %v267_v37 = vshrl.u32 %v266_v33, 23  ;;  %v89_v38 = vpop.permute.xlu1 %88  ;;  %v85_v39 = vpop.permute.xlu0 %84  ;;  %v918_v44 = vshrl.u32 %v120_v34, 5 }
  0x8c   :  { %v95_v41 = vmul.f32 %v91_v12, %v89_v38  ;;  %v94_v42 = vmul.f32 %v91_v12, %v85_v39  ;;  %v158_v39 = vshrl.u32 %v942_v18, 16 }
  0x8d   :  { %v123_v45 = vsub.s32 32, %v122_v36  ;;  %v771_v46 = vadd.s32 4294967169, %v267_v37  ;;  %v125_v48 = vshll.u32 %v854_v47, %v122_v36  ;;  %v128_v52 = vshll.u32 %v855_v51, %v122_v36 }
  0x8e   :  { %v99_v49 = vadd.f32 %v95_v41, %v74_v40  ;;  %v98_v50 = vadd.f32 %v94_v42, %v73_v35  ;;  %v131_v54 = vshll.u32 %v856_v53, %v122_v36  ;;  %v134_v59 = vshll.u32 %v857_v58, %v122_v36 }
  0x8f   :  { %v273_v55 = vadd.s32 1, %v771_v46  ;;  %v126_v56 = vshrl.u32 %v855_v51, %v123_v45  ;;  %v129_v57 = vshrl.u32 %v856_v53, %v123_v45  ;;  %v132_v62 = vshrl.u32 %v857_v58, %v123_v45 }
  0x90   :  { %v926_v60 = vadd.f32 %v798_v17, %v99_v49  ;;  %v928_v61 = vadd.f32 %v798_v17, %v98_v50  ;;  %v135_v1 = vshrl.u32 %v858_v63, %v123_v45  ;;  %v137_v2 = vshll.u32 %v858_v63, %v122_v36 }
  0x91   :  { %vm274_vm1 = vcmp.gt.s32.totalorder %v273_v55, 0  ;;  %v127_v6 = vor.u32 %v126_v56, %v125_v48  ;;  %v130_v7 = vor.u32 %v129_v57, %v128_v52  ;;  %v138_v10 = vshrl.u32 %v859_v9, %v123_v45 }
  0x92   :  { %v576_v3 = vand.u32 2139095040, %v926_v60  ;;  %v421_v4 = vand.u32 2139095040, %v928_v61  ;;  %v136_v8 = vor.u32 %v135_v1, %v134_v59  ;;  %v133_v11 = vor.u32 %v132_v62, %v131_v54 }
  0x93   :  { %vm140_vm2 = vcmp.lt.s32.totalorder %v918_v44, 1  ;;  %v139_v12 = vor.u32 %v138_v10, %v137_v2  ;;  %vm142_vm3 = vcmp.lt.s32.totalorder %v918_v44, 3  ;;  %vm143_vm4 = vcmp.lt.s32.totalorder %v918_v44, 4 }
  0x94   :  { %v275_v13 = vsel %vm274_vm1, %v273_v55, 0  ;;  %v577_v14 = vshrl.u32 %v576_v3, 23  ;;  %v422_v15 = vshrl.u32 %v421_v4, 23  ;;  %vm141_vm5 = vcmp.lt.s32.totalorder %v918_v44, 2 }
  0x95   :  { %v148_v16 = vsel %vm140_vm2, %v127_v6, %v130_v7  ;;  %v149_v17 = vsel %vm143_vm4, %v136_v8, 920167782  ;;  %v124_v19 = vshrl.u32 %v854_v47, %v123_v45  ;;  %v152_v22 = vsel %vm140_vm2, %v130_v7, %v133_v11 }
  0x96   :  { %v150_v20 = vsel %vm142_vm3, %v133_v11, %v149_v17  ;;  %v950_v24 = vand.u32 31, %v275_v13  ;;  %v145_v25 = vsel %vm143_vm4, %v133_v11, 2102212464  ;;  %v153_v27 = vsel %vm143_vm4, %v139_v12, 1326507024 }
  0x97   :  { %v151_v26 = vsel %vm141_vm5, %v148_v16, %v150_v20  ;;  %v777_v28 = vadd.s32 4294967169, %v577_v14  ;;  %v774_v29 = vadd.s32 4294967169, %v422_v15  ;;  %v154_v30 = vsel %vm142_vm3, %v136_v8, %v153_v27 }
  0x98   :  { %v181_v33 = vand.u32 65535, %v151_v26  ;;  %v155_v34 = vsel %vm141_vm5, %v152_v22, %v154_v30  ;;  %v157_v35 = vand.u32 65535, %v942_v18  ;;  %v182_v36 = vshrl.u32 %v151_v26, 16 }
  0x99   :  { %v144_v37 = vsel %vm140_vm2, %v124_v19, %v127_v6  ;;  %v146_v38 = vsel %vm142_vm3, %v130_v7, %v145_v25  ;;  %v966_v40 = vand.u32 8388607, %v263_v23  ;;  %v968_v41 = vshrl.u32 %v275_v13, 5 }
  0x9a   :  { %v159_v42 = vand.u32 65535, %v155_v34  ;;  %v160_v43 = vshrl.u32 %v155_v34, 16  ;;  %v184_v45 = vmul.u32 %v182_v36, %v157_v35  ;;  %v971_v46 = vsub.s32 32, %v950_v24 }
  0x9b   :  { %v973_v48 = vadd.s32 1, %v777_v28  ;;  %v975_v49 = vadd.s32 1, %v774_v29  ;;  %v185_v50 = vmul.u32 %v181_v33, %v158_v39  ;;  %v979_v52 = vsel %vm141_vm5, %v144_v37, %v146_v38 }
  0x9c   :  { %v162_v54 = vmul.u32 %v160_v43, %v157_v35  ;;  %v163_v55 = vmul.u32 %v159_v42, %v158_v39  ;;  %v183_v56 = vmul.u32 %v181_v33, %v157_v35  ;;  %v161_v57 = vmul.u32 %v159_v42, %v157_v35 }
  0x9d   :  { %v164_v59 = vmul.u32 %v160_v43, %v158_v39  ;;  %v186_v62 = vmul.u32 %v182_v36, %v158_v39  ;;  %v187_v1 = vshll.u32 %v184_v45, 16  ;;  %v188_v3 = vshrl.u32 %v184_v45, 16 }
  0x9e   :  { %v165_v2 = vshll.u32 %v162_v54, 16  ;;  %v189_v4 = vshll.u32 %v185_v50, 16  ;;  %v190_v5 = vshrl.u32 %v185_v50, 16  ;;  %v166_v6 = vshrl.u32 %v162_v54, 16 }
  0x9f   :  { %v167_v7 = vshll.u32 %v163_v55, 16  ;;  %vm191_vm6 = vc.u32 %v183_v56, %v187_v1  ;;  %v193_v8 = vadd.s32 %v187_v1, %v183_v56  ;;  %v281_v11 = vshrl.u32 %v855_v51, %v971_v46 }
  0xa0   :  { %vm169_vm7 = vc.u32 %v161_v57, %v165_v2  ;;  %v171_v10 = vadd.s32 %v165_v2, %v161_v57  ;;  %v192_v44 = vsel %vm191_vm6, 1, %v852_v0  ;;  %v168_v12 = vshrl.u32 %v163_v55, 16 }
  0xa1   :  { %v170_v13 = vsel %vm169_vm7, 1, %v852_v0  ;;  %v194_v14 = vadd.s32 %v192_v44, %v186_v62  ;;  %vm195_vm8 = vc.u32 %v193_v8, %v189_v4  ;;  %v280_v17 = vshll.u32 %v854_v47, %v950_v24 }
  0xa2   :  { %v172_v15 = vadd.s32 %v170_v13, %v164_v59  ;;  %vm173_vm9 = vc.u32 %v171_v10, %v167_v7  ;;  %v196_v16 = vsel %vm195_vm8, 1, %v852_v0  ;;  %v283_v22 = vshll.u32 %v855_v51, %v950_v24 }
  0xa3   :  { %v174_v19 = vsel %vm173_vm9, 1, %v852_v0  ;;  %v198_v20 = vadd.s32 %v196_v16, %v194_v14  ;;  %v284_v25 = vshrl.u32 %v856_v53, %v971_v46  ;;  %v282_v27 = vor.u32 %v281_v11, %v280_v17 }
  0xa4   :  { %v176_v26 = vadd.s32 %v174_v19, %v172_v15  ;;  %v286_v28 = vshll.u32 %v856_v53, %v950_v24  ;;  %v287_v29 = vshrl.u32 %v857_v58, %v971_v46  ;;  %v289_v34 = vshll.u32 %v857_v58, %v950_v24 }
  0xa5   :  { %v199_v30 = vadd.s32 %v198_v20, %v188_v3  ;;  %v285_v33 = vor.u32 %v284_v25, %v283_v22  ;;  %v290_v35 = vshrl.u32 %v858_v63, %v971_v46  ;;  %v292_v38 = vshll.u32 %v858_v63, %v950_v24 }
  0xa6   :  { %v177_v36 = vadd.s32 %v176_v26, %v166_v6  ;;  %v288_v37 = vor.u32 %v287_v29, %v286_v28  ;;  %v293_v39 = vshrl.u32 %v859_v9, %v971_v46  ;;  %v1005_v42 = vadd.s32 %v193_v8, %v189_v4 }
  0xa7   :  { %v200_v43 = vadd.s32 %v199_v30, %v190_v5  ;;  %v271_v45 = vor.u32 8388608, %v966_v40  ;;  %v291_v50 = vor.u32 %v290_v35, %v289_v34  ;;  %vm295_vm10 = vcmp.lt.s32.totalorder %v968_v41, 1 }
  0xa8   :  { %v1008_v54 = vadd.s32 %v177_v36, %v168_v12  ;;  %v294_v55 = vor.u32 %v293_v39, %v292_v38  ;;  %vm298_vm11 = vcmp.lt.s32.totalorder %v968_v41, 4  ;;  %vm297_vm12 = vcmp.lt.s32.totalorder %v968_v41, 3 }
  0xa9   :  { %v204_v56 = vadd.s32 1, %v200_v43  ;;  %v303_v24 = vsel %vm295_vm10, %v282_v27, %v285_v33  ;;  %v304_v57 = vsel %vm298_vm11, %v291_v50, 920167782  ;;  %v201_v40 = vmul.u32 %v942_v18, %v979_v52 }
  0xaa   :  { %vm203_vm13 = vc.u32 %v1008_v54, %v1005_v42  ;;  %vm296_vm14 = vcmp.lt.s32.totalorder %v968_v41, 2  ;;  %v305_v59 = vsel %vm297_vm12, %v288_v37, %v304_v57  ;;  %vm584_vm15 = vcmp.gt.s32.totalorder %v973_v48, 0 }
  0xab   :  { %v205_v62 = vsel %vm203_vm13, %v204_v56, %v200_v43  ;;  %v306_v1 = vsel %vm296_vm14, %v303_v24, %v305_v59  ;;  %v307_v2 = vsel %vm295_vm10, %v285_v33, %v288_v37  ;;  %vm429_vm0 = vcmp.gt.s32.totalorder %v975_v49, 0 }
  0xac   :  { %v206_v18 = vadd.s32 %v205_v62, %v201_v40  ;;  %v308_v52 = vsel %vm298_vm11, %v294_v55, 1326507024  ;;  %v1032_v3 = vshll.u32 %v271_v45, 8  ;;  %v279_v4 = vshrl.u32 %v854_v47, %v971_v46 }
  0xad   :  { %v300_v5 = vsel %vm298_vm11, %v288_v37, 2102212464  ;;  %v309_v6 = vsel %vm297_vm12, %v291_v50, %v308_v52  ;;  %v337_v7 = vshrl.u32 %v306_v1, 16  ;;  %v336_v11 = vand.u32 65535, %v306_v1 }
  0xae   :  { %v207_v8 = vadd.s32 536870912, %v206_v18  ;;  %v310_v10 = vsel %vm296_vm14, %v307_v2, %v309_v6  ;;  %v312_v44 = vand.u32 65535, %v1032_v3  ;;  %v585_v12 = vsel %vm584_vm15, %v973_v48, 0 }
  0xaf   :  { %v313_v46 = vshrl.u32 %v1032_v3, 16  ;;  %v314_v13 = vand.u32 65535, %v310_v10  ;;  %v315_v14 = vshrl.u32 %v310_v10, 16  ;;  %v299_v16 = vsel %vm295_vm10, %v279_v4, %v282_v27 }
  0xb0   :  { %v1047_v15 = vshrl.u32 %v207_v8, 30  ;;  %v301_v17 = vsel %vm297_vm12, %v285_v33, %v300_v5  ;;  %v339_v19 = vmul.u32 %v337_v7, %v312_v44  ;;  %v1056_v20 = vsel %vm429_vm0, %v975_v49, 0 }
  0xb1   :  { %v317_v22 = vmul.u32 %v315_v14, %v312_v44  ;;  %v318_v48 = vmul.u32 %v314_v13, %v313_v46  ;;  %v1058_v25 = vshrl.u32 %v585_v12, 5  ;;  %v1060_v26 = vand.u32 31, %v585_v12 }
  0xb2   :  { %v209_v28 = vshll.u32 %v1047_v15, 30  ;;  %v340_v29 = vmul.u32 %v336_v11, %v313_v46  ;;  %v1065_v27 = vsel %vm296_vm14, %v299_v16, %v301_v17  ;;  %v316_v30 = vmul.u32 %v314_v13, %v312_v44 }
  0xb3   :  { %v320_v33 = vshll.u32 %v317_v22, 16  ;;  %v342_v34 = vshll.u32 %v339_v19, 16  ;;  %v319_v36 = vmul.u32 %v315_v14, %v313_v46  ;;  %v338_v49 = vmul.u32 %v336_v11, %v312_v44 }
  0xb4   :  { %v210_v35 = vsub.s32 %v206_v18, %v209_v28  ;;  %v573_v37 = vand.u32 2147483647, %v926_v60  ;;  %v322_v38 = vshll.u32 %v318_v48, 16  ;;  %v341_v43 = vmul.u32 %v337_v7, %v313_v46 }
  0xb5   :  { %vm324_vm1 = vc.u32 %v316_v30, %v320_v33  ;;  %v326_v39 = vadd.s32 %v320_v33, %v316_v30  ;;  %v344_v55 = vshll.u32 %v340_v29, 16  ;;  %vm346_vm4 = vc.u32 %v338_v49, %v342_v34 }
  0xb6   :  { %vm211_vm2 = vcmp.lt.s32.totalorder %v210_v35, 0  ;;  %v212_v45 = vsub.s32 0, %v210_v35  ;;  %v325_v50 = vsel %vm324_vm1, 1, %v852_v0  ;;  %v348_v56 = vadd.s32 %v342_v34, %v338_v49 }
  0xb7   :  { %v327_v41 = vadd.s32 %v325_v50, %v319_v36  ;;  %vm328_vm3 = vc.u32 %v326_v39, %v322_v38  ;;  %v321_v57 = vshrl.u32 %v317_v22, 16  ;;  %v347_v59 = vsel %vm346_vm4, 1, %v852_v0 }
  0xb8   :  { %v213_v24 = vsel %vm211_vm2, %v212_v45, %v210_v35  ;;  %v329_v40 = vsel %vm328_vm3, 1, %v852_v0  ;;  %v349_v2 = vadd.s32 %v347_v59, %v341_v43  ;;  %vm350_vm5 = vc.u32 %v348_v56, %v344_v55 }
  0xb9   :  { %v214_v62 = vclz %v213_v24  ;;  %v331_v1 = vadd.s32 %v329_v40, %v327_v41  ;;  %v1072_v18 = vsub.s32 32, %v1060_v26  ;;  %v202_v52 = vadd.s32 %v1005_v42, %v1008_v54 }
  0xba   :  { %v323_v4 = vshrl.u32 %v318_v48, 16  ;;  %v351_v5 = vsel %vm350_vm5, 1, %v852_v0  ;;  %v343_v8 = vshrl.u32 %v339_v19, 16  ;;  %vm110_vm6 = vcmp.lt.s32.totalorder %v909_v21, 0 }
  0xbb   :  { %v769_v6 = vadd.s32 4294967294, %v214_v62  ;;  %v332_v7 = vadd.s32 %v331_v1, %v321_v57  ;;  %v353_v10 = vadd.s32 %v351_v5, %v349_v2  ;;  %v232_v44 = vsub.s32 4, %v1047_v15 }
  0xbc   :  { %v345_v11 = vshrl.u32 %v340_v29, 16  ;;  %v1079_v12 = vadd.s32 %v348_v56, %v344_v55  ;;  %v356_v46 = vmul.u32 %v1032_v3, %v1065_v27  ;;  %v580_v54 = vand.u32 8388607, %v573_v37 }
  0xbd   :  { %vm770_vm7 = vcmp.lt.s32.totalorder %v769_v6, 0  ;;  %v1083_v13 = vadd.s32 %v332_v7, %v323_v4  ;;  %v354_v42 = vadd.s32 %v353_v10, %v343_v8  ;;  %v590_v16 = vshll.u32 %v854_v47, %v1060_v26 }
  0xbe   :  { %v217_v14 = vsel %vm770_vm7, 0, %v769_v6  ;;  %v593_v17 = vshll.u32 %v855_v51, %v1060_v26  ;;  %v594_v19 = vshrl.u32 %v856_v53, %v1072_v18  ;;  %v591_v28 = vshrl.u32 %v855_v51, %v1072_v18 }
  0xbf   :  { %v218_v22 = vsub.s32 32, %v217_v14  ;;  %v222_v48 = vsub.s32 4294967266, %v217_v14  ;;  %v355_v3 = vadd.s32 %v354_v42, %v345_v11  ;;  %v219_v29 = vshll.u32 %v210_v35, %v217_v14 }
  0xc0   :  { %vm358_vm8 = vc.u32 %v1083_v13, %v1079_v12  ;;  %v1097_v27 = vor.u32 %v594_v19, %v593_v17  ;;  %v596_v30 = vshll.u32 %v856_v53, %v1060_v26  ;;  %v597_v49 = vshrl.u32 %v857_v58, %v1072_v18 }
  0xc1   :  { %v220_v33 = vshrl.u32 %v202_v52, %v218_v22  ;;  %v223_v34 = vadd.s32 127, %v222_v48  ;;  %v359_v36 = vadd.s32 1, %v355_v3  ;;  %v599_v38 = vshll.u32 %v857_v58, %v1060_v26 }
  0xc2   :  { %v600_v35 = vshrl.u32 %v858_v63, %v1072_v18  ;;  %v602_v39 = vshll.u32 %v858_v63, %v1060_v26  ;;  %v603_v43 = vshrl.u32 %v859_v9, %v1072_v18  ;;  %v598_v41 = vor.u32 %v597_v49, %v596_v30 }
  0xc3   :  { %v221_v45 = vor.u32 %v220_v33, %v219_v29  ;;  %v224_v50 = vshll.u32 %v223_v34, 23  ;;  %v360_v55 = vsel %vm358_vm8, %v359_v36, %v355_v3  ;;  %vm1113_vm9 = vcmp.le.f32.partialorder %v108_v32, 0.7853982 }
  0xc4   :  { %v361_v24 = vadd.s32 %v360_v55, %v356_v46  ;;  %v601_v57 = vor.u32 %v600_v35, %v599_v38  ;;  %v604_v40 = vor.u32 %v603_v43, %v602_v39  ;;  %v1118_v59 = vand.u32 31, %v1056_v20 }
  0xc5   :  { %v225_v26 = vor.u32 4788187, %v224_v50  ;;  %v233_v62 = vsel %vm110_vm6, %v232_v44, %v1047_v15  ;;  %v592_v1 = vor.u32 %v591_v28, %v590_v16  ;;  %v581_v52 = vor.u32 8388608, %v580_v54 }
  0xc6   :  { %v362_v2 = vadd.s32 536870912, %v361_v24  ;;  %vm605_vm10 = vcmp.lt.s32.totalorder %v1058_v25, 1  ;;  %vm608_vm11 = vcmp.lt.s32.totalorder %v1058_v25, 4  ;;  %v228_v4 = vcvt.s32.f32 %v221_v45 }
  0xc7   :  { %v226_v32 = vand.u32 2147483647, %v225_v26  ;;  %v614_v5 = vsel %vm608_vm11, %v601_v57, 920167782  ;;  %v617_v6 = vsel %vm605_vm10, %v1097_v27, %v598_v41  ;;  %v235_v7 = vsel %vm1113_vm9, 0, %v233_v62 }
  0xc8   :  { %v1132_v15 = vshrl.u32 %v362_v2, 30  ;;  %vm607_vm12 = vcmp.lt.s32.totalorder %v1058_v25, 3  ;;  %v618_v8 = vsel %vm608_vm11, %v604_v40, 1326507024  ;;  %vm606_vm13 = vcmp.lt.s32.totalorder %v1058_v25, 2 }
  0xc9   :  { %v229_v10 = vmul.f32 %v228_v4, %v226_v32  ;;  %v613_v44 = vsel %vm605_vm10, %v592_v1, %v1097_v27  ;;  %v619_v11 = vsel %vm607_vm12, %v601_v57, %v618_v8  ;;  %v615_v42 = vsel %vm607_vm12, %v598_v41, %v614_v5 }
  0xca   :  { %v364_v46 = vshll.u32 %v1132_v15, 30  ;;  %v620_v54 = vsel %vm606_vm13, %v617_v6, %v619_v11  ;;  %v1148_v14 = vshll.u32 %v581_v52, 8  ;;  %v252_v17 = vadd.s32 3, %v235_v7 }
  0xcb   :  { %v230_v16 = vxor.u32 2147483648, %v229_v10  ;;  %v625_v19 = vshrl.u32 %v620_v54, 16  ;;  %v624_v48 = vand.u32 65535, %v620_v54  ;;  %v1153_v3 = vsub.s32 32, %v1118_v59 }
  0xcc   :  { %v1150_v22 = vsub.s32 %v361_v24, %v364_v46  ;;  %v1159_v29 = vsel %vm606_vm13, %v613_v44, %v615_v42  ;;  %v622_v30 = vand.u32 65535, %v1148_v14  ;;  %v1170_v36 = vshrl.u32 %v1148_v14, 16 }
  0xcd   :  { %v231_v28 = vsel %vm110_vm6, %v230_v16, %v229_v10  ;;  %v1174_v38 = vand.u32 3, %v252_v17  ;;  %v589_v35 = vshrl.u32 %v854_v47, %v1072_v18  ;;  %v357_v43 = vadd.s32 %v1079_v12, %v1083_v13 }
  0xce   :  { %v1165_v33 = vsel %vm1113_vm9, %v909_v21, %v231_v28  ;;  %vm366_vm14 = vcmp.lt.s32.totalorder %v1150_v22, 0  ;;  %v367_v34 = vsub.s32 0, %v1150_v22  ;;  %v627_v39 = vmul.u32 %v625_v19, %v622_v30 }
  0xcf   :  { %v236_v49 = vmul.f32 %v1165_v33, %v1165_v33  ;;  %v1182_v50 = vmul.u32 %v624_v48, %v1170_v36  ;;  %v647_v55 = vshrl.u32 %v1159_v29, 16  ;;  %v609_v26 = vsel %vm605_vm10, %v589_v35, %v592_v1 }
  0xd0   :  { %v368_v45 = vsel %vm366_vm14, %v367_v34, %v1150_v22  ;;  %v630_v40 = vshll.u32 %v627_v39, 16  ;;  %v610_v18 = vsel %vm608_vm11, %v598_v41, 2102212464  ;;  %v626_v62 = vmul.u32 %v624_v48, %v622_v30 }
  0xd1   :  { %v237_v56 = vmul.f32 -0.001358992, %v236_v49  ;;  %v244_v24 = vmul.f32 -0.00019511016, %v236_v49  ;;  %v369_v57 = vclz %v368_v45  ;;  %v646_v12 = vand.u32 65535, %v1159_v29 }
  0xd2   :  { %v629_v32 = vmul.u32 %v625_v19, %v1170_v36  ;;  %v632_v4 = vshll.u32 %v1182_v50, 16  ;;  %vm634_vm15 = vc.u32 %v626_v62, %v630_v40  ;;  %v636_v5 = vadd.s32 %v630_v40, %v626_v62 }
  0xd3   :  { %v238_v13 = vadd.f32 0.041655596, %v237_v56  ;;  %v245_v2 = vadd.f32 0.008332121, %v244_v24  ;;  %v772_v52 = vadd.s32 4294967294, %v369_v57  ;;  %v1192_v6 = vmul.u32 %v647_v55, %v622_v30 }
  0xd4   :  { %v635_v1 = vsel %vm634_vm15, 1, %v852_v0  ;;  %vm265_vm1 = vcmp.lt.s32.totalorder %v912_v31, 0  ;;  %v611_v10 = vsel %vm607_vm12, %v1097_v27, %v610_v18  ;;  %vm638_vm2 = vc.u32 %v636_v5, %v632_v4 }
  0xd5   :  { %v239_v7 = vmul.f32 %v238_v13, %v236_v49  ;;  %v246_v8 = vmul.f32 %v245_v2, %v236_v49  ;;  %vm773_vm0 = vcmp.lt.s32.totalorder %v772_v52, 0  ;;  %v637_v44 = vadd.s32 %v635_v1, %v629_v32 }
  0xd6   :  { %v372_v41 = vsel %vm773_vm0, 0, %v772_v52  ;;  %v650_v54 = vmul.u32 %v646_v12, %v1170_v36  ;;  %vm255_vm3 = vcmp.eq.s32.totalorder %v1174_v38, 0  ;;  %vm258_vm4 = vcmp.eq.s32.totalorder %v1174_v38, 2 }
  0xd7   :  { %v240_v11 = vadd.f32 -0.4999988, %v239_v7  ;;  %v247_v46 = vadd.f32 -0.16666654, %v246_v8  ;;  %v373_v42 = vsub.s32 32, %v372_v41  ;;  %v374_v16 = vshll.u32 %v1150_v22, %v372_v41 }
  0xd8   :  { %v377_v17 = vsub.s32 4294967266, %v372_v41  ;;  %v639_v19 = vsel %vm638_vm2, 1, %v852_v0  ;;  %v652_v48 = vshll.u32 %v1192_v6, 16  ;;  %vm254_vm5 = vcmp.lt.s32.totalorder %v1174_v38, 2 }
  0xd9   :  { %v241_v28 = vmul.f32 %v240_v11, %v236_v49  ;;  %v248_v27 = vmul.f32 %v247_v46, %v236_v49  ;;  %v375_v29 = vshrl.u32 %v357_v43, %v373_v42  ;;  %v641_v34 = vadd.s32 %v639_v19, %v637_v44 }
  0xda   :  { %vm251_vm6 = vweird.f32 %v909_v21  ;;  %vm1209_vm7 = vcmp.le.f32.partialorder %v263_v23, 0.7853982  ;;  %v378_v22 = vadd.s32 127, %v377_v17  ;;  %v387_v45 = vsub.s32 4, %v1132_v15 }
  0xdb   :  { %v631_v56 = vshrl.u32 %v627_v39, 16  ;;  %v648_v24 = vmul.u32 %v646_v12, %v622_v30  ;;  %v242_v57 = vadd.f32 1.0, %v241_v28  ;;  %v249_v40 = vadd.f32 1.0, %v248_v27 }
  0xdc   :  { %v376_v49 = vor.u32 %v375_v29, %v374_v16  ;;  %v654_v18 = vshll.u32 %v650_v54, 16  ;;  %v379_v62 = vshll.u32 %v378_v22, 23  ;;  %v612_v23 = vsel %vm606_vm13, %v609_v26, %v611_v10 }
  0xdd   :  { %v642_v43 = vadd.s32 %v641_v34, %v631_v56  ;;  %vm656_vm8 = vc.u32 %v648_v24, %v652_v48  ;;  %v658_v13 = vadd.s32 %v652_v48, %v648_v24  ;;  %v250_v2 = vmul.f32 %v249_v40, %v1165_v33 }
  0xde   :  { %v259_v52 = vxor.u32 2147483648, %v242_v57  ;;  %v651_v32 = vmul.u32 %v647_v55, %v1170_v36  ;;  %v380_v4 = vor.u32 4788187, %v379_v62  ;;  %v633_v39 = vshrl.u32 %v1182_v50, 16 }
  0xdf   :  { %v657_v30 = vsel %vm656_vm8, 1, %v852_v0  ;;  %vm660_vm9 = vc.u32 %v658_v13, %v654_v18  ;;  %v256_v12 = vxor.u32 2147483648, %v250_v2  ;;  %v388_v5 = vsel %vm265_vm1, %v387_v45, %v1132_v15 }
  0xe0   :  { %v659_v7 = vadd.s32 %v657_v30, %v651_v32  ;;  %v661_v33 = vsel %vm660_vm9, 1, %v852_v0  ;;  %v381_v8 = vand.u32 2147483647, %v380_v4  ;;  %v383_v1 = vcvt.s32.f32 %v376_v49 }
  0xe1   :  { %v1224_v25 = vadd.s32 %v642_v43, %v633_v39  ;;  %v418_v36 = vand.u32 2147483647, %v928_v61  ;;  %v257_v50 = vsel %vm255_vm3, %v242_v57, %v256_v12  ;;  %v260_v55 = vsel %vm258_vm4, %v259_v52, %v250_v2 }
  0xe2   :  { %v653_v26 = vshrl.u32 %v1192_v6, 16  ;;  %v663_v41 = vadd.s32 %v661_v33, %v659_v7  ;;  %v1233_v15 = vshrl.u32 %v1056_v20, 5  ;;  %v261_v10 = vsel %vm254_vm5, %v257_v50, %v260_v55 }
  0xe3   :  { %v384_v44 = vmul.f32 %v383_v1, %v381_v8  ;;  %v1237_v11 = vadd.s32 %v658_v13, %v654_v18  ;;  %v262_v46 = vsel %vm251_vm6, nan, %v261_v10  ;;  %v390_v42 = vsel %vm1209_vm7, 0, %v388_v5 }
  0xe4   :  { %v655_v16 = vshrl.u32 %v650_v54, 16  ;;  %v664_v17 = vadd.s32 %v663_v41, %v653_v26  ;;  %732 = vrot.lane.b32.xlu2 %v262_v46, %s860_s0  ;;  %v666_v20 = vmul.u32 %v1148_v14, %v612_v23  ;;  %v425_v38 = vand.u32 8388607, %v418_v36 }
  0xe5   :  { %v385_v6 = vxor.u32 2147483648, %v384_v44  ;;  %vm668_vm10 = vc.u32 %v1224_v25, %v1237_v11  ;;  %v435_v21 = vshll.u32 %v854_v47, %v1118_v59  ;;  %v439_v54 = vshrl.u32 %v856_v53, %v1153_v3 }
  0xe6   :  { %v665_v19 = vadd.s32 %v664_v17, %v655_v16  ;;  %v442_v48 = vshrl.u32 %v857_v58, %v1153_v3  ;;  %v436_v14 = vshrl.u32 %v855_v51, %v1153_v3  ;;  %v444_v27 = vshll.u32 %v857_v58, %v1118_v59 }
  0xe7   :  { %v386_v28 = vsel %vm265_vm1, %v385_v6, %v384_v44  ;;  %v445_v29 = vshrl.u32 %v858_v63, %v1153_v3  ;;  %v438_v45 = vshll.u32 %v855_v51, %v1118_v59  ;;  %v441_v56 = vshll.u32 %v856_v53, %v1118_v59 }
  0xe8   :  { %v389_v34 = vsel %vm1209_vm7, %v912_v31, %v386_v28  ;;  %v669_v22 = vadd.s32 1, %v665_v19  ;;  %v447_v40 = vshll.u32 %v858_v63, %v1118_v59  ;;  %v448_v58 = vshrl.u32 %v859_v9, %v1153_v3 }
  0xe9   :  { %v391_v24 = vmul.f32 %v389_v34, %v389_v34  ;;  %v446_v57 = vor.u32 %v445_v29, %v444_v27  ;;  %v1277_v49 = vor.u32 %v439_v54, %v438_v45  ;;  %v1279_v18 = vor.u32 %v442_v48, %v441_v56 }
  0xea   :  { %v670_v35 = vsel %vm668_vm10, %v669_v22, %v665_v19  ;;  %vm453_vm11 = vcmp.lt.s32.totalorder %v1233_v15, 4  ;;  %v449_v43 = vor.u32 %v448_v58, %v447_v40  ;;  %v426_v13 = vor.u32 8388608, %v425_v38 }
  0xeb   :  { %v392_v51 = vmul.f32 -0.001358992, %v391_v24  ;;  %v399_v53 = vmul.f32 -0.00019511016, %v391_v24  ;;  %v671_v62 = vadd.s32 %v670_v35, %v666_v20  ;;  %v1282_v2 = vor.u32 %v436_v14, %v435_v21 }
  0xec   :  { %v459_v63 = vsel %vm453_vm11, %v446_v57, 920167782  ;;  %v407_v23 = vadd.s32 3, %v390_v42  ;;  %vm450_vm12 = vcmp.lt.s32.totalorder %v1233_v15, 1  ;;  %vm452_vm13 = vcmp.lt.s32.totalorder %v1233_v15, 3 }
  0xed   :  { %v393_v9 = vadd.f32 0.041655596, %v392_v51  ;;  %v400_v59 = vadd.f32 0.008332121, %v399_v53  ;;  %v672_v52 = vadd.s32 536870912, %v671_v62  ;;  %v462_v12 = vsel %vm450_vm12, %v1277_v49, %v1279_v18 }
  0xee   :  { %v463_v32 = vsel %vm453_vm11, %v449_v43, 1326507024  ;;  %v458_v5 = vsel %vm450_vm12, %v1282_v2, %v1277_v49  ;;  %v460_v7 = vsel %vm452_vm13, %v1279_v18, %v459_v63  ;;  %v1305_v8 = vshll.u32 %v426_v13, 8 }
  0xef   :  { %v394_v4 = vmul.f32 %v393_v9, %v391_v24  ;;  %v401_v39 = vmul.f32 %v400_v59, %v391_v24  ;;  %v1290_v30 = vshrl.u32 %v672_v52, 30  ;;  %v464_v33 = vsel %vm452_vm13, %v446_v57, %v463_v32 }
  0xf0   :  { %vm451_vm14 = vcmp.lt.s32.totalorder %v1233_v15, 2  ;;  %v408_v26 = vand.u32 3, %v407_v23  ;;  %v467_v16 = vand.u32 65535, %v1305_v8  ;;  %v468_v17 = vshrl.u32 %v1305_v8, 16 }
  0xf1   :  { %v395_v1 = vadd.f32 -0.4999988, %v394_v4  ;;  %v402_v50 = vadd.f32 -0.16666654, %v401_v39  ;;  %v674_v55 = vshll.u32 %v1290_v30, 30  ;;  %v465_v41 = vsel %vm451_vm14, %v462_v12, %v464_v33 }
  0xf2   :  { %v461_v42 = vsel %vm451_vm14, %v458_v5, %v460_v7  ;;  %v469_v6 = vand.u32 65535, %v465_v41  ;;  %v470_v20 = vshrl.u32 %v465_v41, 16  ;;  %vm406_vm0 = vweird.f32 %v912_v31 }
  0xf3   :  { %v396_v10 = vmul.f32 %v395_v1, %v391_v24  ;;  %v403_v44 = vmul.f32 %v402_v50, %v391_v24  ;;  %v675_v46 = vsub.s32 %v671_v62, %v674_v55  ;;  %v492_v29 = vshrl.u32 %v461_v42, 16 }
  0xf4   :  { %v472_v54 = vmul.u32 %v470_v20, %v467_v16  ;;  %v1316_v48 = vmul.u32 %v469_v6, %v468_v17  ;;  %vm409_vm1 = vcmp.lt.s32.totalorder %v408_v26, 2  ;;  %v491_v56 = vand.u32 65535, %v461_v42 }
  0xf5   :  { %v397_v38 = vadd.f32 1.0, %v396_v10  ;;  %v404_v19 = vadd.f32 1.0, %v403_v44  ;;  %vm676_vm15 = vcmp.lt.s32.totalorder %v675_v46, 0  ;;  %v677_v21 = vsub.s32 0, %v675_v46 }
  0xf6   :  { %v475_v45 = vshll.u32 %v472_v54, 16  ;;  %vm410_vm2 = vcmp.eq.s32.totalorder %v408_v26, 0  ;;  %vm413_vm3 = vcmp.eq.s32.totalorder %v408_v26, 2  ;;  %v471_v57 = vmul.u32 %v469_v6, %v467_v16 }
  0xf7   :  { %v405_v28 = vmul.f32 %v404_v19, %v389_v34  ;;  %v414_v14 = vxor.u32 2147483648, %v397_v38  ;;  %v678_v27 = vsel %vm676_vm15, %v677_v21, %v675_v46  ;;  %v474_v35 = vmul.u32 %v470_v20, %v468_v17 }
  0xf8   :  { %v679_v22 = vclz %v678_v27  ;;  %v477_v51 = vshll.u32 %v1316_v48, 16  ;;  %vm479_vm4 = vc.u32 %v471_v57, %v475_v45  ;;  %v481_v62 = vadd.s32 %v475_v45, %v471_v57 }
  0xf9   :  { %v411_v24 = vxor.u32 2147483648, %v405_v28  ;;  %v415_v40 = vsel %vm413_vm3, %v414_v14, %v405_v28  ;;  %v494_v34 = vmul.u32 %v492_v29, %v467_v16  ;;  %v480_v13 = vsel %vm479_vm4, 1, %v852_v0 }
  0xfa   :  { %v778_v58 = vadd.s32 4294967294, %v679_v22  ;;  %v495_v63 = vmul.u32 %v491_v56, %v468_v17  ;;  %v482_v52 = vadd.s32 %v480_v13, %v474_v35  ;;  %vm483_vm6 = vc.u32 %v481_v62, %v477_v51 }
  0xfb   :  { %v412_v53 = vsel %vm410_vm2, %v397_v38, %v411_v24  ;;  %v667_v23 = vadd.s32 %v1237_v11, %v1224_v25  ;;  %v484_v39 = vsel %vm483_vm6, 1, %v852_v0  ;;  %v493_v5 = vmul.u32 %v491_v56, %v467_v16 }
  0xfc   :  { %v416_v43 = vsel %vm409_vm1, %v412_v53, %v415_v40  ;;  %vm779_vm5 = vcmp.lt.s32.totalorder %v778_v58, 0  ;;  %v486_v12 = vadd.s32 %v484_v39, %v482_v52  ;;  %v497_v7 = vshll.u32 %v494_v34, 16 }
  0xfd   :  { %v417_v9 = vsel %vm406_vm0, nan, %v416_v43  ;;  %v682_v59 = vsel %vm779_vm5, 0, %v778_v58  ;;  %v476_v31 = vshrl.u32 %v472_v54, 16  ;;  %v496_v55 = vmul.u32 %v492_v29, %v468_v17 }
  0xfe   :  { %734 = vrot.lane.b32.xlu1 %v417_v9, %s860_s0  ;;  %v683_v32 = vsub.s32 32, %v682_v59  ;;  %v687_v4 = vsub.s32 4294967266, %v682_v59  ;;  %v684_v33 = vshll.u32 %v675_v46, %v682_v59  ;;  %v499_v26 = vshll.u32 %v495_v63, 16 }
  0xff   :  { %vm501_vm7 = vc.u32 %v493_v5, %v497_v7  ;;  %v503_v41 = vadd.s32 %v497_v7, %v493_v5  ;;  %v487_v42 = vadd.s32 %v486_v12, %v476_v31  ;;  %v434_v11 = vshrl.u32 %v854_v47, %v1153_v3 }
 0x100   :  { %v685_v1 = vshrl.u32 %v667_v23, %v683_v32  ;;  %v688_v50 = vadd.s32 127, %v687_v4  ;;  %v502_v25 = vsel %vm501_vm7, 1, %v852_v0  ;;  %v455_v16 = vsel %vm453_vm11, %v1279_v18, 2102212464 }
 0x101   :  { %v504_v46 = vadd.s32 %v502_v25, %v496_v55  ;;  %vm505_vm8 = vc.u32 %v503_v41, %v499_v26  ;;  %v478_v17 = vshrl.u32 %v1316_v48, 16  ;;  %v454_v38 = vsel %vm450_vm12, %v434_v11, %v1282_v2 }
 0x102   :  { %v686_v10 = vor.u32 %v685_v1, %v684_v33  ;;  %v689_v44 = vshll.u32 %v688_v50, 23  ;;  %v506_v20 = vsel %vm505_vm8, 1, %v852_v0  ;;  %v498_v19 = vshrl.u32 %v494_v34, 16 }
 0x103   :  { %v508_v21 = vadd.s32 %v506_v20, %v504_v46  ;;  %v456_v47 = vsel %vm452_vm13, %v1277_v49, %v455_v16  ;;  %v488_v3 = vadd.s32 %v487_v42, %v478_v17  ;;  %v500_v18 = vshrl.u32 %v495_v63, 16 }
 0x104   :  { %v690_v6 = vor.u32 4788187, %v689_v44  ;;  %v693_v28 = vcvt.s32.f32 %v686_v10  ;;  %v507_v29 = vadd.s32 %v503_v41, %v499_v26  ;;  %v457_v0 = vsel %vm451_vm14, %v454_v38, %v456_v47 }
 0x105   :  { %v509_v14 = vadd.s32 %v508_v21, %v498_v19  ;;  %vm575_vm10 = vcmp.lt.s32.totalorder %v926_v60, 0  ;;  %vm1346_vm11 = vcmp.le.f32.partialorder %v573_v37, 0.7853982  ;;  %v511_v56 = vmul.u32 %v1305_v8, %v457_v0 }
 0x106   :  { %v691_v54 = vand.u32 2147483647, %v690_v6  ;;  %vm513_vm9 = vc.u32 %v488_v3, %v507_v29  ;;  %v697_v24 = vsub.s32 4, %v1290_v30  ;;  %vm716_vm13 = vweird.f32 %v926_v60 }
 0x107   :  { %v510_v48 = vadd.s32 %v509_v14, %v500_v18  ;;  %v512_v25 = vadd.s32 %v507_v29, %v488_v3  ;;  %vm36_vm2 = vcmask 261120   ;;  %vm420_vm3 = vcmp.lt.s32.totalorder %v928_v61, 0 }
 0x108   :  { %v694_v27 = vmul.f32 %v693_v28, %v691_v54  ;;  %v698_v37 = vsel %vm575_vm10, %v697_v24, %v1290_v30  ;;  %vm419_vm4 = vcmp.le.f32.partialorder %v418_v36, 0.7853982  ;;  %vm744_vm5 = vcmask 376064  }
 0x109   :  { %v514_v2 = vadd.s32 1, %v510_v48  ;;  %v700_v8 = vsel %vm1346_vm11, 0, %v698_v37 }
 0x10a   :  { %v695_v22 = vxor.u32 2147483648, %v694_v27  ;;  %v717_v32 = vadd.s32 3, %v700_v8 }
 0x10b   :  { %v515_v57 = vsel %vm513_vm9, %v514_v2, %v510_v48  ;;  %vm561_vm9 = vweird.f32 %v928_v61 }
 0x10c   :  { %v696_v49 = vsel %vm575_vm10, %v695_v22, %v694_v27  ;;  %v516_v58 = vadd.s32 %v515_v57, %v511_v56  ;;  %v718_v33 = vand.u32 3, %v717_v32  ;;  %v35_v32 = vld [vmem:[%s1391_s2 + $0x18] sm:$0xff] }
 0x10d   :  { %v699_v15 = vsel %vm1346_vm11, %v926_v60, %v696_v49  ;;  %v32_v60 = vld [vmem:[%s1391_s2] sm:$0xff]  ;;  %40 = vst.msk [vmem:[#allocation5 + $0x18] sm:$0xff] %vm36_vm2, %v35_v32 }
 0x10e   :  { %v701_v40 = vmul.f32 %v699_v15, %v699_v15  ;;  %v517_v53 = vadd.s32 536870912, %v516_v58  ;;  %vm720_vm14 = vcmp.eq.s32.totalorder %v718_v33, 0  ;;  %vm723_vm15 = vcmp.eq.s32.totalorder %v718_v33, 2  ;;  %37 = vst.msk [vmem:[#allocation5] sm:$0xff] %vm36_vm2, %v32_v60 }
 0x10f   :  { %vm719_vm1 = vcmp.lt.s32.totalorder %v718_v33, 2 }
 0x110   :  { %v702_v35 = vmul.f32 -0.001358992, %v701_v40  ;;  %v709_v51 = vmul.f32 -0.00019511016, %v701_v40  ;;  %v518_v43 = vshrl.u32 %v517_v53, 30 }
 0x112   :  { %v703_v62 = vadd.f32 0.041655596, %v702_v35  ;;  %v710_v34 = vadd.f32 0.008332121, %v709_v51  ;;  %v519_v9 = vshll.u32 %v518_v43, 30  ;;  %v542_v14 = vsub.s32 4, %v518_v43 }
 0x114   :  { %v704_v13 = vmul.f32 %v703_v62, %v701_v40  ;;  %v711_v63 = vmul.f32 %v710_v34, %v701_v40  ;;  %v520_v23 = vsub.s32 %v516_v58, %v519_v9  ;;  %v543_v22 = vsel %vm420_vm3, %v542_v14, %v518_v43 }
 0x115   :  { %v545_v49 = vsel %vm419_vm4, 0, %v543_v22 }
 0x116   :  { %v705_v59 = vadd.f32 -0.4999988, %v704_v13  ;;  %v712_v52 = vadd.f32 -0.16666654, %v711_v63  ;;  %vm521_vm12 = vcmp.lt.s32.totalorder %v520_v23, 0  ;;  %v522_v12 = vsub.s32 0, %v520_v23 }
 0x118   :  { %v706_v4 = vmul.f32 %v705_v59, %v701_v40  ;;  %v713_v39 = vmul.f32 %v712_v52, %v701_v40  ;;  %v523_v30 = vsel %vm521_vm12, %v522_v12, %v520_v23  ;;  %v562_v40 = vadd.s32 3, %v545_v49  ;;  %v34_v59 = vld [vmem:[%s1391_s2 + $0x10] sm:$0xff] }
 0x119   :  { %v524_v1 = vclz %v523_v30  ;;  %39 = vst.msk [vmem:[#allocation5 + $0x10] sm:$0xff] %vm36_vm2, %v34_v59 }
 0x11a   :  { %v707_v5 = vadd.f32 1.0, %v706_v4  ;;  %v714_v7 = vadd.f32 1.0, %v713_v39  ;;  %v563_v53 = vand.u32 3, %v562_v40 }
 0x11b   :  { %v775_v55 = vadd.s32 4294967294, %v524_v1 }
 0x11c   :  { %v715_v50 = vmul.f32 %v714_v7, %v699_v15  ;;  %v724_v31 = vxor.u32 2147483648, %v707_v5  ;;  %vm565_vm6 = vcmp.eq.s32.totalorder %v563_v53, 0  ;;  %vm568_vm7 = vcmp.eq.s32.totalorder %v563_v53, 2 }
 0x11d   :  { %vm776_vm0 = vcmp.lt.s32.totalorder %v775_v55, 0  ;;  %vm564_vm8 = vcmp.lt.s32.totalorder %v563_v53, 2 }
 0x11e   :  { %v721_v26 = vxor.u32 2147483648, %v715_v50  ;;  %v725_v10 = vsel %vm723_vm15, %v724_v31, %v715_v50  ;;  %v527_v44 = vsel %vm776_vm0, 0, %v775_v55 }
 0x11f   :  { %v528_v11 = vsub.s32 32, %v527_v44  ;;  %v532_v16 = vsub.s32 4294967266, %v527_v44  ;;  %v529_v6 = vshll.u32 %v520_v23, %v527_v44  ;;  %v33_v23 = vld [vmem:[%s1391_s2 + $0x8] sm:$0xff]  ;;  %s862_s2 = smov 128  }
 0x120   :  { %v722_v41 = vsel %vm720_vm14, %v707_v5, %v721_v26  ;;  %38 = vst.msk [vmem:[#allocation5 + $0x8] sm:$0xff] %vm36_vm2, %v33_v23 }
 0x121   :  { %v726_v42 = vsel %vm719_vm1, %v722_v41, %v725_v10  ;;  %v530_v17 = vshrl.u32 %v512_v25, %v528_v11  ;;  %v533_v20 = vadd.s32 127, %v532_v16 }
 0x122   :  { %v727_v46 = vsel %vm716_vm13, nan, %v726_v42 }
 0x123   :  { %738 = vrot.lane.b32.xlu0 %v727_v46, %s860_s0  ;;  %v531_v38 = vor.u32 %v530_v17, %v529_v6  ;;  %v534_v19 = vshll.u32 %v533_v20, 23 }
 0x125   :  { %v535_v21 = vor.u32 4788187, %v534_v19  ;;  %v538_v28 = vcvt.s32.f32 %v531_v38 }
 0x127   :  { %v536_v54 = vand.u32 2147483647, %v535_v21 }
 0x129   :  { %v539_v47 = vmul.f32 %v538_v28, %v536_v54 }
 0x12b   :  { %v540_v3 = vxor.u32 2147483648, %v539_v47 }
 0x12d   :  { %v541_v18 = vsel %vm420_vm3, %v540_v3, %v539_v47 }
 0x12e   :  { %v544_v27 = vsel %vm419_vm4, %v928_v61, %v541_v18 }
 0x12f   :  { %v546_v29 = vmul.f32 %v544_v27, %v544_v27 }
 0x131   :  { %v547_v0 = vmul.f32 -0.001358992, %v546_v29  ;;  %v554_v48 = vmul.f32 -0.00019511016, %v546_v29 }
 0x133   :  { %v548_v2 = vadd.f32 0.041655596, %v547_v0  ;;  %v555_v45 = vadd.f32 0.008332121, %v554_v48 }
 0x135   :  { %v549_v56 = vmul.f32 %v548_v2, %v546_v29  ;;  %v556_v24 = vmul.f32 %v555_v45, %v546_v29 }
 0x137   :  { %v550_v15 = vadd.f32 -0.4999988, %v549_v56  ;;  %v557_v57 = vadd.f32 -0.16666654, %v556_v24 }
 0x139   :  { %v551_v58 = vmul.f32 %v550_v15, %v546_v29  ;;  %v558_v35 = vmul.f32 %v557_v57, %v546_v29 }
 0x13b   :  { %v552_v51 = vadd.f32 1.0, %v551_v58  ;;  %v559_v36 = vadd.f32 1.0, %v558_v35 }
 0x13d   :  { %v560_v37 = vmul.f32 %v559_v36, %v544_v27  ;;  %v569_v62 = vxor.u32 2147483648, %v552_v51 }
 0x13e   :  { %v733_v34 = vpop.permute.xlu2 %732 }
 0x13f   :  { %745 = vst.msk [vmem:[#allocation5] sm:$0xff] %vm744_vm5, %v733_v34  ;;  %v566_v43 = vxor.u32 2147483648, %v560_v37  ;;  %v570_v13 = vsel %vm568_vm7, %v569_v62, %v560_v37 }
 0x141   :  { %v567_v8 = vsel %vm565_vm6, %v552_v51, %v566_v43 }
 0x142   :  { %v571_v63 = vsel %vm564_vm8, %v567_v8, %v570_v13 }
 0x143   :  { %v572_v9 = vsel %vm561_vm9, nan, %v571_v63 }
 0x144   :  { %736 = vrot.lane.b32.xlu2 %v572_v9, %s860_s0 }
 0x170   :  { %v735_v52 = vpop.permute.xlu1 %734 }
 0x171   :  { %746 = vst.msk [vmem:[#allocation5 + $0x8] sm:$0xff] %vm744_vm5, %v735_v52 }
 0x195   :  { %v739_v61 = vpop.permute.xlu0 %738 }
 0x196   :  { %748 = vst.msk [vmem:[#allocation5 + $0x18] sm:$0xff] %vm744_vm5, %v739_v61 }
 0x19e   :  { %v737_v4 = vpop.permute.xlu2 %736 }
 0x19f   :  { %747 = vst.msk [vmem:[#allocation5 + $0x10] sm:$0xff] %vm744_vm5, %v737_v4 }
 0x1a0   :  { %761 = dma.vmem_to_hbm [thread:$0]  %s754_s11, 512, %s756_s14, [#allocation4], %s862_s2, %s862_s2, %s863_s15  }
 0x1a1   :  { %849 = dma.done.wait [#allocation4], 512  }
 0x1a2   :  { %850 = vsyncadd [#allocation4], 4294966784 }
 0x1a3   :  { %766 = vsyncpa [#allocation3], 1 }
 0x1a4   :  { %767 = vsyncpa [#allocation4], 1 }

</bundles_post_ra>
